<compile_context>
chip_gen: v5e
topology: v5e:2x2
jax: 0.10.0
libtpu: 0.0.40
codegen_flags: <defaults>
</compile_context>

<pallas_src>
import jax
import jax.numpy as jnp
from jax.experimental import pallas as pl
from jax.experimental.pallas import tpu as pltpu


_LANE = 128
_SUBLANE_BF16 = 16


def _lmhead_kernel(x_ref, w_ref, b_ref, o_ref):
    # x_ref: (tm, d_in) bf16, w_ref: (d_in, tn) bf16, b_ref: (1, tn) f32,
    # o_ref: (tm, tn) out dtype.  f32 accumulation on the MXU.
    acc = jnp.dot(x_ref[...], w_ref[...], preferred_element_type=jnp.float32)
    o_ref[...] = (acc + b_ref[...]).astype(o_ref.dtype)


def _round_up(x, m):
    return (x + m - 1) // m * m


def _vmem_capacity_bytes():
    # Per-generation physical VMEM (v5e/v6e: 128 MiB, v7x: 64 MiB).  Fall back
    # to the smallest (v7x) capacity if the query is unavailable.
    try:
        return int(pltpu.get_tpu_info().vmem_capacity_bytes)
    except Exception:
        return 64 * 1024 * 1024


def lm_head(x, weight_t, bias, *, compute_dtype=jnp.bfloat16,
            tile_m=256, tile_n=None, out_dtype=None):
    """y = x @ weight_t + bias  (PyTorch nn.Linear forward, weight_t = weight.T).

    x:        [..., d_in]      (cast to compute_dtype only if needed)
    weight_t: [d_in, d_out]    (store in compute_dtype to avoid any per-call cast)
    bias:     [d_out]
    returns:  [..., d_out] in `out_dtype` (default: x.dtype; pass bf16 to halve
              logits store traffic when the consumer tolerates it).
    """
    *lead, d_in = x.shape
    d_out = weight_t.shape[1]
    out_dtype = out_dtype or x.dtype
    bytes_c = jnp.dtype(compute_dtype).itemsize
    bytes_o = jnp.dtype(out_dtype).itemsize

    m = 1
    for s in lead:
        m *= s

    # ---- VMEM budget ----
    vmem_cap = _vmem_capacity_bytes()
    budget = vmem_cap - 8 * 1024 * 1024  # headroom for Mosaic internal scratch

    # ---- tile selection ----
    # M: multiple of 16 (bf16 sublane pack); a single block for decode-size M.
    tm = min(_round_up(max(m, _SUBLANE_BF16), _SUBLANE_BF16), tile_m)
    grid_m = pl.cdiv(m, tm)

    # Conservative double-buffered working-set estimate (inputs + output blocks).
    def est(tn):
        return 2 * (tm * d_in * bytes_c + d_in * tn * bytes_c + tn * 4
                    + tm * tn * bytes_o)

    # N (vocab): largest lane-aligned tile whose working set fits the budget;
    # a single full-dim block when the vocab is small.  Keeping tn >= 512 keeps
    # each strided weight-DMA row >= 1 KiB contiguous where VMEM allows.
    tn_cap = tile_n if tile_n is not None else 2048
    if d_out <= tn_cap and est(d_out) <= budget:
        tn = d_out
    else:
        tn = _round_up(min(tn_cap, d_out), _LANE)
        while tn > _LANE and est(tn) > budget:
            tn -= _LANE
        # TODO(synk): tile K (f32 accumulator scratch) if even tn=128 overflows
        # VMEM, i.e. for very large d_in.
    grid_n = pl.cdiv(d_out, tn)

    # ---- operand prep (no weight pad; casts are no-ops if pre-stored) ----
    x2d = x.reshape(m, d_in)
    if x2d.dtype != compute_dtype:
        x2d = x2d.astype(compute_dtype)
    w = weight_t if weight_t.dtype == compute_dtype else weight_t.astype(compute_dtype)
    b2d = bias.reshape(1, d_out).astype(jnp.float32)

    vmem_limit = int(min(max(2 * est(tn), 32 * 1024 * 1024), budget))

    out2d = pl.pallas_call(
        _lmhead_kernel,
        out_shape=jax.ShapeDtypeStruct((m, d_out), out_dtype),
        grid_spec=pltpu.PrefetchScalarGridSpec(
            num_scalar_prefetch=0,
            # N outer, M inner -> each weight column tile is DMA'd once and
            # reused across all M blocks (unchanged block index skips re-DMA).
            grid=(grid_n, grid_m),
            in_specs=[
                pl.BlockSpec((tm, d_in), lambda n, mi: (mi, 0)),   # activations
                pl.BlockSpec((d_in, tn), lambda n, mi: (0, n)),    # weight tile
                pl.BlockSpec((1, tn), lambda n, mi: (0, n)),       # bias tile
            ],
            out_specs=pl.BlockSpec((tm, tn), lambda n, mi: (mi, n)),
        ),
        compiler_params=pltpu.CompilerParams(
            # Vocab axis parallel (megacore split) so each weight byte crosses
            # HBM once per chip; M axis sequential within a core.
            dimension_semantics=("parallel", "arbitrary"),
            vmem_limit_bytes=vmem_limit,
        ),
    )(x2d, w, b2d)

    return out2d.reshape(*lead, d_out)


if __name__ == "__main__":
    key = jax.random.PRNGKey(0)
    kx, kw, kb = jax.random.split(key, 3)

    # ---- decode-style small shapes (single block, full-vocab tile) ----
    B, S, D_IN, D_OUT = 2, 8, 32, 64
    x = jax.random.normal(kx, (B, S, D_IN), dtype=jnp.float32)
    # Deterministic init mimicking nn.Linear uniform(-1/sqrt(d_in), 1/sqrt(d_in)).
    bound = 1.0 / (D_IN ** 0.5)
    weight = jax.random.uniform(kw, (D_OUT, D_IN), minval=-bound, maxval=bound,
                                dtype=jnp.float32)  # PyTorch layout [d_out, d_in]
    bias = jax.random.uniform(kb, (D_OUT,), minval=-bound, maxval=bound,
                              dtype=jnp.float32)

    # Store the transposed weight in the compute dtype ONCE (no per-call cast/pad).
    weight_t = weight.T.astype(jnp.bfloat16)

    y = jax.block_until_ready(lm_head(x, weight_t, bias))
    y_ref = x @ weight.T + bias  # kernel streams bf16 -> loose tolerance
    assert y.shape == (B, S, D_OUT)
    assert jnp.allclose(y, y_ref, atol=3e-2, rtol=3e-2)

    # ---- tiled path with masked edge blocks (forced small tiles) ----
    B2, S2, D_IN2, D_OUT2 = 2, 9, 32, 200   # M=18 (edge vs tm=16), N edge vs 128
    x2 = jax.random.normal(kx, (B2, S2, D_IN2), dtype=jnp.float32)
    w2 = jax.random.uniform(kw, (D_OUT2, D_IN2), minval=-0.2, maxval=0.2,
                            dtype=jnp.float32)
    b2 = jax.random.uniform(kb, (D_OUT2,), minval=-0.2, maxval=0.2,
                            dtype=jnp.float32)
    w2_t = w2.T.astype(jnp.bfloat16)

    y2 = jax.block_until_ready(lm_head(x2, w2_t, b2, tile_m=16, tile_n=128))
    y2_ref = x2 @ w2.T + b2
    assert y2.shape == (B2, S2, D_OUT2)
    assert jnp.allclose(y2, y2_ref, atol=5e-2, rtol=5e-2)

    print("KERNEL_OK")
</pallas_src>

<mosaic_0001>
module attributes {stable_mosaic.version = 11 : i64} {
  func.func @_lmhead_kernel(%arg0: i32, %arg1: i32, %arg2: memref<16x32xbf16, #tpu.memory_space<vmem>>, %arg3: memref<32x64xbf16, #tpu.memory_space<vmem>>, %arg4: memref<1x64xf32, #tpu.memory_space<vmem>>, %arg5: memref<16x64xf32, #tpu.memory_space<vmem>>) attributes {dimension_semantics = [#tpu.dimension_semantics<parallel>, #tpu.dimension_semantics<arbitrary>], iteration_bounds = array<i64: 1, 1>, scalar_prefetch = 0 : i64, scratch_operands = 0 : i64, tpu.core_type = #tpu.core_type<tc>, window_params = [{transform_indices = @transform_0, window_bounds = array<i64: 16, 32>}, {transform_indices = @transform_1, window_bounds = array<i64: 32, 64>}, {transform_indices = @transform_2, window_bounds = array<i64: 1, 64>}, {transform_indices = @transform_3, window_bounds = array<i64: 16, 64>}]} {
    %c0 = arith.constant 0 : index
    %c0_0 = arith.constant 0 : index
    %0 = vector.load %arg2[%c0, %c0_0] : memref<16x32xbf16, #tpu.memory_space<vmem>>, vector<16x32xbf16>
    %c0_1 = arith.constant 0 : index
    %c0_2 = arith.constant 0 : index
    %1 = vector.load %arg3[%c0_1, %c0_2] : memref<32x64xbf16, #tpu.memory_space<vmem>>, vector<32x64xbf16>
    %cst = arith.constant dense<0.000000e+00> : vector<16x64xf32>
    %2 = tpu.matmul %0, %1, %cst {dimension_numbers = #tpu.dot_dimension_numbers<[1], [0], [0], [1], [0, 0, 1, 1], [], []>} : vector<16x32xbf16>, vector<32x64xbf16>, vector<16x64xf32> -> vector<16x64xf32>
    %c0_3 = arith.constant 0 : index
    %c0_4 = arith.constant 0 : index
    %3 = vector.load %arg4[%c0_3, %c0_4] : memref<1x64xf32, #tpu.memory_space<vmem>>, vector<1x64xf32>
    %4 = vector.broadcast %3 : vector<1x64xf32> to vector<16x64xf32>
    %5 = arith.addf %2, %4 : vector<16x64xf32>
    %c0_5 = arith.constant 0 : index
    %c0_6 = arith.constant 0 : index
    %6 = vector.load %arg5[%c0_5, %c0_6] : memref<16x64xf32, #tpu.memory_space<vmem>>, vector<16x64xf32>
    tpu.vector_store %arg5[%c0_5, %c0_6], %5 {strides = array<i32>} : memref<16x64xf32, #tpu.memory_space<vmem>>, vector<16x64xf32>,
    return
  }
  func.func @transform_0(%arg0: i32, %arg1: i32) -> (i32, i32) {
    %c0_i32 = arith.constant 0 : i32
    %c0_i32_0 = arith.constant 0 : i32
    return %arg1, %c0_i32 : i32, i32
  }
  func.func @transform_1(%arg0: i32, %arg1: i32) -> (i32, i32) {
    %c0_i32 = arith.constant 0 : i32
    %c0_i32_0 = arith.constant 0 : i32
    return %c0_i32, %arg0 : i32, i32
  }
  func.func @transform_2(%arg0: i32, %arg1: i32) -> (i32, i32) {
    %c0_i32 = arith.constant 0 : i32
    %c0_i32_0 = arith.constant 0 : i32
    return %c0_i32, %arg0 : i32, i32
  }
  func.func @transform_3(%arg0: i32, %arg1: i32) -> (i32, i32) {
    %c0_i32 = arith.constant 0 : i32
    return %arg1, %arg0 : i32, i32
  }
}

</mosaic_0001>

<bundles_post_ra>
// kernel: tpu_custom_call.1
= control target key start
LH: loop header
LB: loop body
LE: loop exit
PB: predicated region body
PF: predicated region fallthrough
CT: control target
= control target key end

     0   :  { %8 = vsyncpa [#allocation3], 0  ;;  %s257_s0 = inlined_call_operand.hbm [shape: bf16[16,32], index: 0, kind: input, shape index: {}]   ;;  %s258_s1 = inlined_call_operand.hbm [shape: bf16[32,64], index: 1, kind: input, shape index: {}]   ;;  %s259_s2 = inlined_call_operand.vmem [shape: f32[1,64], index: 2, kind: input, shape index: {}]   ;;  %s260_s3 = inlined_call_operand.hbm [shape: f32[16,64], index: 3, kind: output, shape index: {}]  }
   0x1   :  { %9 = vsyncpa [#allocation6], 0 }
   0x2   :  { %10 = vsyncpa [#allocation4], 0  ;;  %s15_s14 = sshll.u32 %s257_s0, 4  ;;  %s218_s15 = smov [#allocation2]   ;;  %s16_s14 = int_to_ptr.hbm [resolvable:$true] %s15_s14 }
   0x3   :  { %s17_s16 = sshll.u32 %s218_s15, 4  ;;  %s28_s19 = sshll.u32 %s258_s1, 4  ;;  %s18_s16 = int_to_ptr.vmem [resolvable:$true] %s17_s16  ;;  %s29_s19 = int_to_ptr.hbm [resolvable:$true] %s28_s19 }
   0x4   :  { %s219_s20 = smov 64   ;;  %s220_s21 = smov 4  }
   0x5   :  { %23 = dma.hbm_to_vmem [thread:$0]  %s16_s14, 128, %s18_s16, [#allocation3], %s219_s20, %s219_s20, %s220_s21  }
   0x6   :  { %s221_s22 = smov [#allocation5]  }
   0x7   :  { %s30_s23 = sshll.u32 %s221_s22, 4  ;;  %s31_s23 = int_to_ptr.vmem [resolvable:$true] %s30_s23 }
   0x8   :  { %36 = dma.hbm_to_vmem [thread:$0]  %s29_s19, 256, %s31_s23, [#allocation6], %s219_s20, %s219_s20, %s220_s21  }
   0x9   :  { %212 = dma.done.wait [#allocation3], 128  }
   0xa   :  { %213 = vsyncadd [#allocation3], 4294967168 }
   0xb   :  { %214 = dma.done.wait [#allocation6], 256  }
   0xc   :  { %215 = vsyncadd [#allocation6], 4294967040  ;;  %v131_v0 = vld [vmem:[#allocation5 + $0x8] sm:$0xff]  ;;  %v130_v1 = vld [vmem:[#allocation5] sm:$0xff]  ;;  %vm75_vm0 = vcmask 261120   ;;  %vm93_vm1 = vcmask 523264  }
   0xd   :  { %85 = vmatpush.bf16.msra.mxu0 %v131_v0  ;;  %v129_v2 = vld [vmem:[#allocation2] sm:$0xff]  ;;  %s222_s24 = smov [#allocation7]   ;;  %s102_s28 = sshll.u32 %s260_s3, 4  ;;  %s103_s28 = int_to_ptr.hbm [resolvable:$true] %s102_s28 }
   0xe   :  { %v139_v3 = vld [vmem:[%s259_s2] ss:$0 sm:$0xff]  ;;  %s100_s25 = sshll.u32 %s222_s24, 4  ;;  %s223_s29 = smov 128   ;;  %s101_s25 = int_to_ptr.vmem [resolvable:$true] %s100_s25 }
   0xf   :  { %s224_s30 = smov 8  }
  0x11   :  { %86 = vmatpush.bf16.msra.mxu0 %v130_v1 }
  0x14   :  { %128 = vmatmul.msk.bf16.vlgmr.msra.gmra.mxu0 %vm75_vm0, %v129_v2 }
  0x91   :  { %v88_v4 = vpop.f32.mrf.mxu0 }
  0x92   :  { %v89_v5 = vadd.f32 %v139_v3, %v88_v4 }
  0x94   :  { %94 = vst.msk [vmem:[#allocation7] sm:$0xff] %vm93_vm1, %v89_v5 }
  0x99   :  { %v90_v6 = vpop.f32.mrf.mxu0 }
  0x9a   :  { %v91_v7 = vadd.f32 %v139_v3, %v90_v6 }
  0x9c   :  { %95 = vst.msk [vmem:[#allocation7 + $0x8] sm:$0xff] %vm93_vm1, %v91_v7 }
  0x9d   :  { %108 = dma.vmem_to_hbm [thread:$0]  %s101_s25, 256, %s103_s28, [#allocation4], %s223_s29, %s223_s29, %s224_s30  }
  0x9e   :  { %216 = dma.done.wait [#allocation4], 256  }
  0x9f   :  { %217 = vsyncadd [#allocation4], 4294967040 }
  0xa0   :  { %113 = vsyncpa [#allocation3], 1 }
  0xa1   :  { %114 = vsyncpa [#allocation6], 1 }
  0xa2   :  { %115 = vsyncpa [#allocation4], 1 }

</bundles_post_ra>
